<compile_context>
chip_gen: v6e
topology: v6e:2x2x1
jax: 0.10.0
libtpu: 0.0.40
codegen_flags: <defaults>
</compile_context>

<pallas_src>
import jax
import jax.numpy as jnp
import numpy as np
from jax.experimental import pallas as pl
from jax.experimental.pallas import tpu as pltpu


def _round_up(x, m):
    return (x + m - 1) // m * m


# ---------------------------------------------------------------------------
# Pallas kernel (hot path): K-fused phase-decomposed ConvTranspose2d + BN stats
# ---------------------------------------------------------------------------
def _deconv_stats_kernel(xw_ref, t_ref, y_ref, psum_ref, psq_ref):
    """One MXU matmul per grid step + per-step partial BatchNorm sums.

    xw_ref   : (TM, KF)   bf16/f32  windowed input rows (K-fused, zero padded)
    t_ref    : (KF, COLS) bf16/f32  fused Toeplitz weight slab (grid-resident)
    y_ref    : (TM, COLS) f32       conv output rows (lane dense, no bias)
    psum_ref : (1, COLS)  f32       partial sum of y over this row block
    psq_ref  : (1, COLS)  f32       partial sum of y*y over this row block
    """
    y = jnp.dot(xw_ref[...], t_ref[...], preferred_element_type=jnp.float32)
    y_ref[...] = y
    psum_ref[...] = jnp.sum(y, axis=0, keepdims=True)
    psq_ref[...] = jnp.sum(y * y, axis=0, keepdims=True)


# ---------------------------------------------------------------------------
# UpSampleConv forward (glue in plain JAX, compute in Pallas)
# ---------------------------------------------------------------------------
def upsample_conv_forward(x_nchw, w_t, bias, gamma, beta, *,
                          kernel=4, stride=2, padding=1,
                          use_batchnorm=True, eps=1e-5,
                          matmul_dtype=jnp.bfloat16):
    """x_nchw: [N, Cin, H, W];  w_t: ConvTranspose2d weight [Cin, Cout, K, K]."""
    N, Cin, H, W = x_nchw.shape
    Cout = w_t.shape[1]
    assert (kernel, stride, padding) == (4, 2, 1), (
        "phase decomposition is specialized to the module's k=4, s=2, p=1")

    OH, OW = stride * H, stride * W
    KD = (W + 2) * Cin               # per-phase contraction length
    KF = _round_up(3 * KD, 128)      # fused (3-phase) contraction, lane aligned
    COLS = 2 * OW * Cout             # lane-dense output columns (rh, ow, oc)

    # ---- input prep: NHWC, zero-pad spatially, window the 3 row phases so the
    #      kernel does a single (TM, KF) @ (KF, COLS) matmul (no in-kernel
    #      sublane-unaligned row slices).
    x = jnp.transpose(x_nchw, (0, 2, 3, 1)).astype(jnp.float32)
    xp = jnp.pad(x, ((0, 0), (1, 1), (1, 1), (0, 0))).reshape(N, H + 2, KD)
    xw = jnp.concatenate([xp[:, j:j + H, :] for j in range(3)], axis=-1)
    xw = jnp.pad(xw, ((0, 0), (0, 0), (0, KF - 3 * KD)))
    xw = xw.reshape(N * H, KF).astype(matmul_dtype)

    # ---- fused Toeplitz weight slab T : (KF, COLS) such that
    #  y[n, 2a+rh, 2b+rw, oc] = sum_{j,r} xw[n*H+a, j*KD+r]
    #                                   * T[j*KD+r, rh*OW*Cout+(2b+rw)*Cout+oc]
    #  with kh = 3-rh-2*dh, kw = 3-rw-2*dw and j = rh+dh.
    w_f = w_t.astype(jnp.float32)
    t = jnp.zeros((3, KD, COLS), jnp.float32)
    b_idx = jnp.arange(W)
    ic_idx = jnp.arange(Cin)
    oc_idx = jnp.arange(Cout)
    for rh in range(2):
        for dh in range(2):
            j, kh = rh + dh, 3 - rh - 2 * dh
            for rw in range(2):
                for dw in range(2):
                    kw = 3 - rw - 2 * dw
                    rows = (b_idx + rw + dw)[:, None] * Cin + ic_idx[None, :]      # (W, Cin)
                    cols = (rh * OW * Cout
                            + (2 * b_idx + rw)[:, None] * Cout + oc_idx[None, :])  # (W, Cout)
                    t = t.at[j, rows[:, :, None], cols[:, None, :]].add(
                        w_f[None, :, :, kh, kw])
    t_fused = jnp.pad(t.reshape(3 * KD, COLS),
                      ((0, KF - 3 * KD), (0, 0))).astype(matmul_dtype)
    # TODO(synk): for large W/Cin/Cout, tile the COLS axis of the resident slab
    # (it is O(W^2*Cin*Cout)) and/or switch to the 4-phase sub-pixel
    # (M, 4*Cin) @ (4*Cin, Cout) formulation — the slab's structural zeros
    # inflate MXU FLOPs by ~(W+2)/2 once the kernel stops being overhead-bound.

    # ---- row tiling: flatten (n, a) rows so the matmul M dim is big.
    M = N * H
    if M >= 512:
        TM = 512
    elif M >= 256:
        TM = 256
    else:
        TM = _round_up(M, 16)
    M_pad = _round_up(M, TM)
    G = M_pad // TM
    if M_pad != M:
        # Zero rows contribute exactly zero to y and to the BN partial sums
        # (the deconv bias is applied in the epilogue, not in the kernel).
        xw = jnp.pad(xw, ((0, M_pad - M), (0, 0)))

    y_rows, psum, psq = pl.pallas_call(
        _deconv_stats_kernel,
        out_shape=(jax.ShapeDtypeStruct((M_pad, COLS), jnp.float32),
                   jax.ShapeDtypeStruct((G, COLS), jnp.float32),
                   jax.ShapeDtypeStruct((G, COLS), jnp.float32)),
        grid=(G,),
        in_specs=[
            pl.BlockSpec((TM, KF), lambda g: (g, 0)),      # row block
            pl.BlockSpec((KF, COLS), lambda g: (0, 0)),    # resident weights
        ],
        out_specs=(
            pl.BlockSpec((TM, COLS), lambda g: (g, 0)),
            pl.BlockSpec((1, COLS), lambda g: (g, 0)),
            pl.BlockSpec((1, COLS), lambda g: (g, 0)),
        ),
        compiler_params=pltpu.CompilerParams(
            dimension_semantics=("parallel",),             # v7x: both TCs usable
            vmem_limit_bytes=32 * 1024 * 1024),
    )(xw, t_fused)

    # ---- epilogue: one fused XLA pass over the conv output —
    #      BN affine (or bias) + (a, rh) row interleave + NHWC -> NCHW.
    y = y_rows[:M].reshape(N, H, 2, OW, Cout)
    if use_batchnorm:
        count = float(N * OH * OW)
        sum_c = jnp.sum(psum, axis=0).reshape(2 * OW, Cout).sum(axis=0)
        sq_c = jnp.sum(psq, axis=0).reshape(2 * OW, Cout).sum(axis=0)
        mean_c = sum_c / count
        var_c = sq_c / count - mean_c * mean_c             # biased (training mode)
        scale_c = gamma.astype(jnp.float32) * jax.lax.rsqrt(var_c + eps)
        shift_c = beta.astype(jnp.float32) - mean_c * scale_c
        # conv bias is cancelled exactly by the mean subtraction -> omitted.
        y = y * scale_c + shift_c
    else:
        y = y + bias.astype(jnp.float32)
    # TODO(synk): self.act (ReLU) is constructed in __init__ but never called
    # in forward(); dropout defaults to False — both intentionally omitted.
    y = y.reshape(N, OH, OW, Cout)
    return jnp.transpose(y, (0, 3, 1, 2))


# ---------------------------------------------------------------------------
# Pure-JAX reference (for sanity check)
# ---------------------------------------------------------------------------
def reference_forward(x_nchw, w_t, bias, gamma, beta, kernel=4, stride=2,
                      padding=1, eps=1e-5):
    N, Cin, H, W = x_nchw.shape
    Cout = w_t.shape[1]
    K = kernel
    x = jnp.transpose(x_nchw, (0, 2, 3, 1))
    pad_eq = K - 1 - padding
    w_hwio = jnp.transpose(jnp.flip(w_t, axis=(2, 3)), (2, 3, 0, 1))  # [K,K,Cin,Cout]
    y = jax.lax.conv_general_dilated(
        x, w_hwio, window_strides=(1, 1),
        padding=[(pad_eq, pad_eq), (pad_eq, pad_eq)],
        lhs_dilation=(stride, stride),
        dimension_numbers=("NHWC", "HWIO", "NHWC")) + bias.reshape(1, 1, 1, Cout)
    mean = jnp.mean(y, axis=(0, 1, 2), keepdims=True)
    var = jnp.mean((y - mean) ** 2, axis=(0, 1, 2), keepdims=True)
    y = (y - mean) * jax.lax.rsqrt(var + eps) * gamma.reshape(1, 1, 1, Cout) \
        + beta.reshape(1, 1, 1, Cout)
    return jnp.transpose(y, (0, 3, 1, 2))


if __name__ == "__main__":
    # small shapes consistent with the module: N=2, Cin=4, H=W=16, Cout=8
    N, Cin, H, W = 2, 4, 16, 16
    Cout, K = 8, 4

    key = jax.random.PRNGKey(0)
    kx, kw, kb = jax.random.split(key, 3)

    x = jax.random.normal(kx, (N, Cin, H, W), jnp.float32)
    # ConvTranspose2d weight shape: [in_channels, out_channels, K, K]
    fan_in = Cin * K * K
    bound = 1.0 / np.sqrt(fan_in)
    w_t = jax.random.uniform(kw, (Cin, Cout, K, K), jnp.float32, -bound, bound)
    bias = jax.random.uniform(kb, (Cout,), jnp.float32, -bound, bound)
    gamma = jnp.ones((Cout,), jnp.float32)   # BatchNorm2d default init
    beta = jnp.zeros((Cout,), jnp.float32)

    # default (perf) path: bf16 MXU inputs, f32 accumulation / BN
    out = jax.block_until_ready(upsample_conv_forward(x, w_t, bias, gamma, beta))
    assert out.shape == (N, Cout, 2 * H, 2 * W), out.shape

    # f32 path (same kernel, f32 MXU inputs) to validate the algorithm tightly
    out_f32 = jax.block_until_ready(
        upsample_conv_forward(x, w_t, bias, gamma, beta,
                              matmul_dtype=jnp.float32))

    ref = jax.block_until_ready(reference_forward(x, w_t, bias, gamma, beta))
    np.testing.assert_allclose(np.asarray(out_f32), np.asarray(ref),
                               rtol=2e-3, atol=2e-3)
    # bf16 inputs round-trip ~2^-9 per operand; after BN normalization the
    # expected element error is ~1e-3 rms (<1e-2 worst case).
    np.testing.assert_allclose(np.asarray(out), np.asarray(ref),
                               rtol=1e-2, atol=1e-2)
    print("KERNEL_OK")
</pallas_src>

<mosaic_0001>
module attributes {stable_mosaic.version = 11 : i64} {
  func.func @_deconv_stats_kernel(%arg0: i32, %arg1: memref<32x256xbf16, #tpu.memory_space<vmem>>, %arg2: memref<256x512xbf16, #tpu.memory_space<vmem>>, %arg3: memref<32x512xf32, #tpu.memory_space<vmem>>, %arg4: memref<1x512xf32, #tpu.memory_space<vmem>>, %arg5: memref<1x512xf32, #tpu.memory_space<vmem>>) attributes {dimension_semantics = [#tpu.dimension_semantics<parallel>], iteration_bounds = array<i64: 1>, scalar_prefetch = 0 : i64, scratch_operands = 0 : i64, tpu.core_type = #tpu.core_type<tc>, window_params = [{transform_indices = @transform_0, window_bounds = array<i64: 32, 256>}, {pipeline_mode = #tpu.pipeline_mode<synchronous>, transform_indices = @transform_1, window_bounds = array<i64: 256, 512>}, {transform_indices = @transform_2, window_bounds = array<i64: 32, 512>}, {transform_indices = @transform_3, window_bounds = array<i64: 1, 512>}, {transform_indices = @transform_4, window_bounds = array<i64: 1, 512>}]} {
    %c0 = arith.constant 0 : index
    %c0_0 = arith.constant 0 : index
    %0 = vector.load %arg1[%c0, %c0_0] : memref<32x256xbf16, #tpu.memory_space<vmem>>, vector<32x256xbf16>
    %c0_1 = arith.constant 0 : index
    %c0_2 = arith.constant 0 : index
    %1 = vector.load %arg2[%c0_1, %c0_2] : memref<256x512xbf16, #tpu.memory_space<vmem>>, vector<256x512xbf16>
    %cst = arith.constant dense<0.000000e+00> : vector<32x512xf32>
    %2 = tpu.matmul %0, %1, %cst {dimension_numbers = #tpu.dot_dimension_numbers<[1], [0], [0], [1], [0, 0, 1, 1], [], []>} : vector<32x256xbf16>, vector<256x512xbf16>, vector<32x512xf32> -> vector<32x512xf32>
    %c0_3 = arith.constant 0 : index
    %c0_4 = arith.constant 0 : index
    %3 = vector.load %arg3[%c0_3, %c0_4] : memref<32x512xf32, #tpu.memory_space<vmem>>, vector<32x512xf32>
    tpu.vector_store %arg3[%c0_3, %c0_4], %2 {strides = array<i32>} : memref<32x512xf32, #tpu.memory_space<vmem>>, vector<32x512xf32>,
    %cst_5 = arith.constant dense<0.000000e+00> : vector<512xf32>
    %4 = vector.multi_reduction <add>, %2, %cst_5 [0] : vector<32x512xf32> to vector<512xf32>
    %5 = vector.shape_cast %4 : vector<512xf32> to vector<1x512xf32>
    %c0_6 = arith.constant 0 : index
    %c0_7 = arith.constant 0 : index
    %6 = vector.load %arg4[%c0_6, %c0_7] : memref<1x512xf32, #tpu.memory_space<vmem>>, vector<1x512xf32>
    tpu.vector_store %arg4[%c0_6, %c0_7], %5 {strides = array<i32>} : memref<1x512xf32, #tpu.memory_space<vmem>>, vector<1x512xf32>,
    %7 = arith.mulf %2, %2 : vector<32x512xf32>
    %cst_8 = arith.constant dense<0.000000e+00> : vector<512xf32>
    %8 = vector.multi_reduction <add>, %7, %cst_8 [0] : vector<32x512xf32> to vector<512xf32>
    %9 = vector.shape_cast %8 : vector<512xf32> to vector<1x512xf32>
    %c0_9 = arith.constant 0 : index
    %c0_10 = arith.constant 0 : index
    %10 = vector.load %arg5[%c0_9, %c0_10] : memref<1x512xf32, #tpu.memory_space<vmem>>, vector<1x512xf32>
    tpu.vector_store %arg5[%c0_9, %c0_10], %9 {strides = array<i32>} : memref<1x512xf32, #tpu.memory_space<vmem>>, vector<1x512xf32>,
    return
  }
  func.func @transform_0(%arg0: i32) -> (i32, i32) {
    %c0_i32 = arith.constant 0 : i32
    %c0_i32_0 = arith.constant 0 : i32
    return %arg0, %c0_i32 : i32, i32
  }
  func.func @transform_1(%arg0: i32) -> (i32, i32) {
    %c0_i32 = arith.constant 0 : i32
    %c0_i32_0 = arith.constant 0 : i32
    %c0_i32_1 = arith.constant 0 : i32
    return %c0_i32, %c0_i32_0 : i32, i32
  }
  func.func @transform_2(%arg0: i32) -> (i32, i32) {
    %c0_i32 = arith.constant 0 : i32
    %c0_i32_0 = arith.constant 0 : i32
    return %arg0, %c0_i32 : i32, i32
  }
  func.func @transform_3(%arg0: i32) -> (i32, i32) {
    %c0_i32 = arith.constant 0 : i32
    %c0_i32_0 = arith.constant 0 : i32
    return %arg0, %c0_i32 : i32, i32
  }
  func.func @transform_4(%arg0: i32) -> (i32, i32) {
    %c0_i32 = arith.constant 0 : i32
    %c0_i32_0 = arith.constant 0 : i32
    return %arg0, %c0_i32 : i32, i32
  }
}

</mosaic_0001>

<bundles_post_ra>
// kernel: tpu_custom_call.1
= control target key start
LH: loop header
LB: loop body
LE: loop exit
PB: predicated region body
PF: predicated region fallthrough
CT: control target
= control target key end

     0   :  { %10 = vsyncpa [#allocation3], 0  ;;  %s1138_s0 = inlined_call_operand.hbm [shape: bf16[32,256], index: 0, kind: input, shape index: {}]   ;;  %s1139_s1 = inlined_call_operand.hbm [shape: bf16[256,512], index: 1, kind: input, shape index: {}]   ;;  %s1140_s2 = inlined_call_operand.hbm [shape: f32[32,512], index: 2, kind: output, shape index: {0}]   ;;  %s1141_s3 = inlined_call_operand.hbm [shape: f32[1,512], index: 3, kind: output, shape index: {1}]   ;;  %s1142_s4 = inlined_call_operand.hbm [shape: f32[1,512], index: 4, kind: output, shape index: {2}]  }
   0x1   :  { %11 = vsyncpa [#allocation6], 0 }
   0x2   :  { %12 = vsyncpa [#allocation4], 0 }
   0x3   :  { %13 = vsyncpa [#allocation9], 0  ;;  %s1061_s15 = smov [#allocation2]  }
   0x4   :  { %s19_s16 = sshll.u32 %s1061_s15, 4  ;;  %s20_s16 = int_to_ptr.vmem [resolvable:$true] %s19_s16 }
   0x5   :  { %s961_s17 = scalar_lea.vmem %s20_s16, 512  ;;  %p966_p1 = scmp.lt.s32.totalorder %s20_s16, %s20_s16 }
   0x6   :  { %p962_p0 = scmp.ne.s32.totalorder %s20_s16, %s961_s17  ;;  %p967_p2 = scmp.lt.s32.totalorder %s961_s17, %s961_s17 }
   0x8   :  { %p968_p3 = por %p967_p2, %p966_p1 }
   0xa   :  { %p969_p4 = pnand %p968_p3, %p962_p0 }
   0xc   :  { %972 = shalt.err (!%p969_p4)
}
   0xd   :  { %s1062_s18 = smov 128   ;;  %s1063_s19 = smov 8  }
   0xe   :  { %25 = dma.hbm_to_vmem [thread:$0]  %s1138_s0, 512, %s20_s16, [#allocation3], %s1062_s18, %s1062_s18, %s1063_s19  }
   0xf   :  { %s1064_s22 = smov [#allocation5]  }
  0x10   :  { %s31_s23 = sshll.u32 %s1064_s22, 4  ;;  %s32_s23 = int_to_ptr.vmem [resolvable:$true] %s31_s23 }
  0x11   :  { %s981_s24 = scalar_lea.vmem %s32_s23, 8192  ;;  %p986_p6 = scmp.lt.s32.totalorder %s32_s23, %s32_s23 }
  0x12   :  { %p982_p5 = scmp.ne.s32.totalorder %s32_s23, %s981_s24  ;;  %p987_p7 = scmp.lt.s32.totalorder %s981_s24, %s981_s24 }
  0x14   :  { %p988_p8 = por %p987_p7, %p986_p6 }
  0x16   :  { %p989_p9 = pnand %p988_p8, %p982_p5 }
  0x18   :  { %992 = shalt.err (!%p989_p9)
}
  0x19   :  { %s1065_s25 = smov 256   ;;  %s1066_s26 = smov 16  }
  0x1a   :  { %37 = dma.hbm_to_vmem [thread:$0]  %s1139_s1, 8192, %s32_s23, [#allocation6], %s1065_s25, %s1065_s25, %s1066_s26  }
  0x1b   :  { %1053 = dma.done.wait [#allocation3], 512  }
  0x1c   :  { %1054 = vsyncadd [#allocation3], 4294966784 }
  0x1d   :  { %1055 = dma.done.wait [#allocation6], 8192  }
  0x1e   :  { %1056 = vsyncadd [#allocation6], 4294959104  ;;  %v851_v0 = vld [vmem:[#allocation5 + $0xe4] ss:$16 sps:$4 sm:$0xff]   ;;  %v853_v1 = vld [vmem:[#allocation5 + $0xec] ss:$16 sps:$4 sm:$0xff]  }
  0x1f   :  { %452 = vmatprep.subr.bf16.mxu0 %v851_v0  ;;  %v855_v2 = vld [vmem:[#allocation5 + $0xe0] ss:$16 sps:$4 sm:$0xff]   ;;  %v856_v3 = vld [vmem:[#allocation5 + $0xe8] ss:$16 sps:$4 sm:$0xff]   ;;  %505 = vmatprep.subr.bf16.mxu1 %v853_v1  ;;  %v857_v4 = vld [vmem:[#allocation5 + $0xc4] ss:$16 sps:$4 sm:$0xff]  }
  0x20   :  { %453 = vmatpush1.bf16.msra.mxu0 %v855_v2  ;;  %506 = vmatpush1.bf16.msra.mxu1 %v856_v3  ;;  %v859_v5 = vld [vmem:[#allocation5 + $0xcc] ss:$16 sps:$4 sm:$0xff]   ;;  %v861_v6 = vld [vmem:[#allocation5 + $0xc0] ss:$16 sps:$4 sm:$0xff]   ;;  %v862_v7 = vld [vmem:[#allocation5 + $0xc8] ss:$16 sps:$4 sm:$0xff]  }
  0x21   :  { %454 = vmatprep.subr.bf16.mxu0 %v857_v4  ;;  %507 = vmatprep.subr.bf16.mxu1 %v859_v5  ;;  %v863_v8 = vld [vmem:[#allocation5 + $0xa4] ss:$16 sps:$4 sm:$0xff]   ;;  %v865_v9 = vld [vmem:[#allocation5 + $0xac] ss:$16 sps:$4 sm:$0xff]   ;;  %v867_v10 = vld [vmem:[#allocation5 + $0xa0] ss:$16 sps:$4 sm:$0xff]  }
  0x22   :  { %v868_v11 = vld [vmem:[#allocation5 + $0xa8] ss:$16 sps:$4 sm:$0xff]   ;;  %v869_v12 = vld [vmem:[#allocation5 + $0x84] ss:$16 sps:$4 sm:$0xff]   ;;  %v871_v13 = vld [vmem:[#allocation5 + $0x8c] ss:$16 sps:$4 sm:$0xff]  }
  0x23   :  { %v873_v14 = vld [vmem:[#allocation5 + $0x80] ss:$16 sps:$4 sm:$0xff]   ;;  %v874_v15 = vld [vmem:[#allocation5 + $0x88] ss:$16 sps:$4 sm:$0xff]   ;;  %v875_v16 = vld [vmem:[#allocation5 + $0x64] ss:$16 sps:$4 sm:$0xff]  }
  0x24   :  { %455 = vmatpush1.bf16.msra.mxu0 %v861_v6  ;;  %508 = vmatpush1.bf16.msra.mxu1 %v862_v7  ;;  %v877_v17 = vld [vmem:[#allocation5 + $0x6c] ss:$16 sps:$4 sm:$0xff]   ;;  %v879_v18 = vld [vmem:[#allocation5 + $0x60] ss:$16 sps:$4 sm:$0xff]   ;;  %v880_v19 = vld [vmem:[#allocation5 + $0x68] ss:$16 sps:$4 sm:$0xff]  }
  0x25   :  { %456 = vmatprep.subr.bf16.mxu0 %v863_v8  ;;  %509 = vmatprep.subr.bf16.mxu1 %v865_v9  ;;  %v881_v20 = vld [vmem:[#allocation5 + $0x44] ss:$16 sps:$4 sm:$0xff]   ;;  %v883_v21 = vld [vmem:[#allocation5 + $0x4c] ss:$16 sps:$4 sm:$0xff]   ;;  %v885_v22 = vld [vmem:[#allocation5 + $0x40] ss:$16 sps:$4 sm:$0xff]  }
  0x26   :  { %v886_v23 = vld [vmem:[#allocation5 + $0x48] ss:$16 sps:$4 sm:$0xff]   ;;  %v887_v24 = vld [vmem:[#allocation5 + $0x24] ss:$16 sps:$4 sm:$0xff]   ;;  %v889_v25 = vld [vmem:[#allocation5 + $0x2c] ss:$16 sps:$4 sm:$0xff]  }
  0x27   :  { %v891_v26 = vld [vmem:[#allocation5 + $0x20] ss:$16 sps:$4 sm:$0xff]   ;;  %v892_v27 = vld [vmem:[#allocation5 + $0x28] ss:$16 sps:$4 sm:$0xff]   ;;  %v893_v28 = vld [vmem:[#allocation5 + $0x4] ss:$16 sps:$4 sm:$0xff]  }
  0x28   :  { %457 = vmatpush1.bf16.msra.mxu0 %v867_v10  ;;  %510 = vmatpush1.bf16.msra.mxu1 %v868_v11  ;;  %v895_v29 = vld [vmem:[#allocation5 + $0xc] ss:$16 sps:$4 sm:$0xff]   ;;  %v897_v30 = vld [vmem:[#allocation5] ss:$16 sps:$4 sm:$0xff]   ;;  %v898_v31 = vld [vmem:[#allocation5 + $0x8] ss:$16 sps:$4 sm:$0xff]   ;;  %v619_v10 = vlaneseq }
  0x29   :  { %458 = vmatprep.subr.bf16.mxu0 %v869_v12  ;;  %511 = vmatprep.subr.bf16.mxu1 %v871_v13  ;;  %v899_v32 = vld [vmem:[#allocation5 + $0x1e4] ss:$16 sps:$4 sm:$0xff]   ;;  %v901_v33 = vld [vmem:[#allocation5 + $0x1ec] ss:$16 sps:$4 sm:$0xff]   ;;  %v903_v34 = vld [vmem:[#allocation5 + $0x1e0] ss:$16 sps:$4 sm:$0xff]  }
  0x2a   :  { %v904_v35 = vld [vmem:[#allocation5 + $0x1e8] ss:$16 sps:$4 sm:$0xff]   ;;  %v905_v36 = vld [vmem:[#allocation5 + $0x1c4] ss:$16 sps:$4 sm:$0xff]   ;;  %v907_v37 = vld [vmem:[#allocation5 + $0x1cc] ss:$16 sps:$4 sm:$0xff]  }
  0x2b   :  { %v909_v38 = vld [vmem:[#allocation5 + $0x1c0] ss:$16 sps:$4 sm:$0xff]   ;;  %v910_v39 = vld [vmem:[#allocation5 + $0x1c8] ss:$16 sps:$4 sm:$0xff]   ;;  %v911_v40 = vld [vmem:[#allocation5 + $0x1a4] ss:$16 sps:$4 sm:$0xff]  }
  0x2c   :  { %459 = vmatpush1.bf16.msra.mxu0 %v873_v14  ;;  %512 = vmatpush1.bf16.msra.mxu1 %v874_v15  ;;  %v913_v41 = vld [vmem:[#allocation5 + $0x1ac] ss:$16 sps:$4 sm:$0xff]   ;;  %v915_v42 = vld [vmem:[#allocation5 + $0x1a0] ss:$16 sps:$4 sm:$0xff]   ;;  %v916_v43 = vld [vmem:[#allocation5 + $0x1a8] ss:$16 sps:$4 sm:$0xff]  }
  0x2d   :  { %460 = vmatprep.subr.bf16.mxu0 %v875_v16  ;;  %513 = vmatprep.subr.bf16.mxu1 %v877_v17  ;;  %v917_v44 = vld [vmem:[#allocation5 + $0x184] ss:$16 sps:$4 sm:$0xff]   ;;  %v919_v45 = vld [vmem:[#allocation5 + $0x18c] ss:$16 sps:$4 sm:$0xff]   ;;  %v921_v46 = vld [vmem:[#allocation5 + $0x180] ss:$16 sps:$4 sm:$0xff]  }
  0x2e   :  { %v949_v47 = vld [vmem:[#allocation2 + $0x4] ss:$8 sps:$4 sm:$0xff]   ;;  %v922_v48 = vld [vmem:[#allocation5 + $0x188] ss:$16 sps:$4 sm:$0xff]   ;;  %v927_v51 = vld [vmem:[#allocation5 + $0x160] ss:$16 sps:$4 sm:$0xff]  }
  0x2f   :  { %v923_v49 = vld [vmem:[#allocation5 + $0x164] ss:$16 sps:$4 sm:$0xff]   ;;  %v925_v50 = vld [vmem:[#allocation5 + $0x16c] ss:$16 sps:$4 sm:$0xff]   ;;  %484 = vmatprep.mubr.bf16.mxu0 %v949_v47  ;;  %537 = vmatprep.mubr.bf16.mxu1 %v949_v47  ;;  %v928_v52 = vld [vmem:[#allocation5 + $0x168] ss:$16 sps:$4 sm:$0xff]  }
  0x30   :  { %461 = vmatpush1.bf16.msra.mxu0 %v879_v18  ;;  %514 = vmatpush1.bf16.msra.mxu1 %v880_v19  ;;  %v929_v53 = vld [vmem:[#allocation5 + $0x144] ss:$16 sps:$4 sm:$0xff]   ;;  %v931_v54 = vld [vmem:[#allocation5 + $0x14c] ss:$16 sps:$4 sm:$0xff]   ;;  %v933_v55 = vld [vmem:[#allocation5 + $0x140] ss:$16 sps:$4 sm:$0xff]  }
  0x31   :  { %462 = vmatprep.subr.bf16.mxu0 %v881_v20  ;;  %515 = vmatprep.subr.bf16.mxu1 %v883_v21  ;;  %v934_v56 = vld [vmem:[#allocation5 + $0x148] ss:$16 sps:$4 sm:$0xff]   ;;  %v935_v57 = vld [vmem:[#allocation5 + $0x124] ss:$16 sps:$4 sm:$0xff]   ;;  %v937_v58 = vld [vmem:[#allocation5 + $0x12c] ss:$16 sps:$4 sm:$0xff]  }
  0x32   :  { %v939_v59 = vld [vmem:[#allocation5 + $0x120] ss:$16 sps:$4 sm:$0xff]   ;;  %v940_v60 = vld [vmem:[#allocation5 + $0x128] ss:$16 sps:$4 sm:$0xff]   ;;  %v941_v61 = vld [vmem:[#allocation5 + $0x104] ss:$16 sps:$4 sm:$0xff]  }
  0x33   :  { %v943_v62 = vld [vmem:[#allocation5 + $0x10c] ss:$16 sps:$4 sm:$0xff]   ;;  %v945_v63 = vld [vmem:[#allocation5 + $0x100] ss:$16 sps:$4 sm:$0xff]   ;;  %v946_v0 = vld [vmem:[#allocation5 + $0x108] ss:$16 sps:$4 sm:$0xff]  }
  0x34   :  { %463 = vmatpush1.bf16.msra.mxu0 %v885_v22  ;;  %516 = vmatpush1.bf16.msra.mxu1 %v886_v23  ;;  %v947_v1 = vld [vmem:[#allocation2] ss:$8 sps:$4 sm:$0xff]   ;;  %v950_v2 = vld [vmem:[#allocation2 + $0x14] ss:$8 sps:$4 sm:$0xff]   ;;  %v952_v3 = vld [vmem:[#allocation2 + $0x10] ss:$8 sps:$4 sm:$0xff]  }
  0x35   :  { %464 = vmatprep.subr.bf16.mxu0 %v887_v24  ;;  %517 = vmatprep.subr.bf16.mxu1 %v889_v25  ;;  %v1067_v8 = vmov 1966171168   ;;  %v1108_v20 = vshrl.u32 %v619_v10, 7  ;;  %s1068_s0 = smov [#allocation7]  }
  0x36   :  { %v1104_v9 = vunpack.c.l.s4 %v1067_v8  ;;  %s731_s1 = sshll.u32 %s1068_s0, 4  ;;  %s1110_s1 = int_to_ptr.vmem [resolvable:$true] %s731_s1 }
  0x37   :  { %s993_s29 = scalar_lea.vmem %s1110_s1, 2048  ;;  %p998_p11 = scmp.lt.s32.totalorder %s1110_s1, %s1110_s1 }
  0x38   :  { %465 = vmatpush1.bf16.msra.mxu0 %v891_v26  ;;  %518 = vmatpush1.bf16.msra.mxu1 %v892_v27  ;;  %v618_v19 = vunpack.c.0.s8 %v1104_v9  ;;  %p994_p10 = scmp.ne.s32.totalorder %s1110_s1, %s993_s29  ;;  %p999_p12 = scmp.lt.s32.totalorder %s993_s29, %s993_s29 }
  0x39   :  { %466 = vmatprep.subr.bf16.mxu0 %v893_v28  ;;  %519 = vmatprep.subr.bf16.mxu1 %v895_v29 }
  0x3a   :  { %p1000_p13 = por %p999_p12, %p998_p11 }
  0x3c   :  { %467 = vmatpush1.bf16.msra.mxu0 %v897_v30  ;;  %520 = vmatpush1.bf16.msra.mxu1 %v898_v31  ;;  %p1001_p0 = pnand %p1000_p13, %p994_p10 }
  0x3d   :  { %468 = vmatprep.subr.bf16.mxu0 %v899_v32  ;;  %521 = vmatprep.subr.bf16.mxu1 %v901_v33 }
  0x40   :  { %469 = vmatpush2.bf16.msra.mxu0 %v903_v34  ;;  %522 = vmatpush2.bf16.msra.mxu1 %v904_v35 }
  0x41   :  { %470 = vmatprep.subr.bf16.mxu0 %v905_v36  ;;  %523 = vmatprep.subr.bf16.mxu1 %v907_v37 }
  0x44   :  { %471 = vmatpush2.bf16.msra.mxu0 %v909_v38  ;;  %524 = vmatpush2.bf16.msra.mxu1 %v910_v39 }
  0x45   :  { %472 = vmatprep.subr.bf16.mxu0 %v911_v40  ;;  %525 = vmatprep.subr.bf16.mxu1 %v913_v41 }
  0x48   :  { %473 = vmatpush2.bf16.msra.mxu0 %v915_v42  ;;  %526 = vmatpush2.bf16.msra.mxu1 %v916_v43 }
  0x49   :  { %474 = vmatprep.subr.bf16.mxu0 %v917_v44  ;;  %527 = vmatprep.subr.bf16.mxu1 %v919_v45 }
  0x4c   :  { %475 = vmatpush2.bf16.msra.mxu0 %v921_v46  ;;  %528 = vmatpush2.bf16.msra.mxu1 %v922_v48 }
  0x4d   :  { %476 = vmatprep.subr.bf16.mxu0 %v923_v49  ;;  %529 = vmatprep.subr.bf16.mxu1 %v925_v50 }
  0x50   :  { %477 = vmatpush2.bf16.msra.mxu0 %v927_v51  ;;  %530 = vmatpush2.bf16.msra.mxu1 %v928_v52 }
  0x51   :  { %478 = vmatprep.subr.bf16.mxu0 %v929_v53  ;;  %531 = vmatprep.subr.bf16.mxu1 %v931_v54 }
  0x54   :  { %479 = vmatpush2.bf16.msra.mxu0 %v933_v55  ;;  %532 = vmatpush2.bf16.msra.mxu1 %v934_v56 }
  0x55   :  { %480 = vmatprep.subr.bf16.mxu0 %v935_v57  ;;  %533 = vmatprep.subr.bf16.mxu1 %v937_v58 }
  0x58   :  { %481 = vmatpush2.bf16.msra.mxu0 %v939_v59  ;;  %534 = vmatpush2.bf16.msra.mxu1 %v940_v60 }
  0x59   :  { %482 = vmatprep.subr.bf16.mxu0 %v941_v61  ;;  %535 = vmatprep.subr.bf16.mxu1 %v943_v62 }
  0x5c   :  { %483 = vmatpush2.bf16.msra.mxu0 %v945_v63  ;;  %536 = vmatpush2.bf16.msra.mxu1 %v946_v0 }
  0x5f   :  { %485 = vmatmul.mubr.bf16.vlgmr.msra.gmra.mxu0 %v947_v1  ;;  %538 = vmatmul.mubr.bf16.vlgmr.msra.gmra.mxu1 %v947_v1 }
  0x60   :  { %494 = vmatprep.mubr.bf16.mxu0 %v950_v2  ;;  %547 = vmatprep.mubr.bf16.mxu1 %v950_v2 }
  0x67   :  { %495 = vmatmul.mubr.bf16.gmra.mxu0 %v952_v3  ;;  %548 = vmatmul.mubr.bf16.gmra.mxu1 %v952_v3 }
 0x11f   :  { %v486_v4 = vpop.f32.mrf.mxu0  ;;  %v539_v5 = vpop.f32.mrf.mxu1 }
 0x120   :  { %558 = vst [vmem:[#allocation7] sm:$0xff] %v486_v4  ;;  %560 = vst [vmem:[#allocation7 + $0x10] sm:$0xff] %v539_v5  ;;  %v644_v17 = vmul.f32 %v486_v4, %v486_v4  ;;  %v646_v21 = vmul.f32 %v539_v5, %v539_v5 }
 0x121   :  { %v488_v6 = vpop.f32.mrf.mxu0  ;;  %v541_v7 = vpop.f32.mrf.mxu1 }
 0x122   :  { %559 = vst [vmem:[#allocation7 + $0x8] sm:$0xff] %v488_v6  ;;  %561 = vst [vmem:[#allocation7 + $0x18] sm:$0xff] %v541_v7  ;;  %v645_v22 = vmul.f32 %v488_v6, %v488_v6  ;;  %v647_v23 = vmul.f32 %v541_v7, %v541_v7 }
 0x123   :  { %v490_v11 = vpop.f32.mrf.mxu0  ;;  %v543_v12 = vpop.f32.mrf.mxu1 }
 0x124   :  { %562 = vst [vmem:[#allocation7 + $0x20] sm:$0xff] %v490_v11  ;;  %v648_v13 = vmul.f32 %v490_v11, %v490_v11  ;;  %564 = vst [vmem:[#allocation7 + $0x30] sm:$0xff] %v543_v12  ;;  %v650_v14 = vmul.f32 %v543_v12, %v543_v12  ;;  %v574_v27 = vadd.f32 %v490_v11, %v486_v4 }
 0x125   :  { %v492_v15 = vpop.f32.mrf.mxu0  ;;  %v545_v16 = vpop.f32.mrf.mxu1  ;;  %v592_v29 = vadd.f32 %v543_v12, %v539_v5 }
 0x126   :  { %563 = vst [vmem:[#allocation7 + $0x28] sm:$0xff] %v492_v15  ;;  %v649_v18 = vmul.f32 %v492_v15, %v492_v15  ;;  %565 = vst [vmem:[#allocation7 + $0x38] sm:$0xff] %v545_v16  ;;  %v651_v24 = vmul.f32 %v545_v16, %v545_v16  ;;  %v660_v28 = vadd.f32 %v648_v13, %v644_v17 }
 0x127   :  { %v496_v25 = vpop.f32.mrf.mxu0  ;;  %v549_v26 = vpop.f32.mrf.mxu1  ;;  %v678_v31 = vadd.f32 %v650_v14, %v646_v21  ;;  %v583_v32 = vadd.f32 %v492_v15, %v488_v6  ;;  %v601_v33 = vadd.f32 %v545_v16, %v541_v7 }
 0x128   :  { %566 = vst [vmem:[#allocation7 + $0x40] sm:$0xff] %v496_v25  ;;  %v652_v30 = vmul.f32 %v496_v25, %v496_v25  ;;  %568 = vst [vmem:[#allocation7 + $0x50] sm:$0xff] %v549_v26  ;;  %v654_v34 = vmul.f32 %v549_v26, %v549_v26  ;;  %v669_v37 = vadd.f32 %v649_v18, %v645_v22 }
 0x129   :  { %v498_v35 = vpop.f32.mrf.mxu0  ;;  %v551_v36 = vpop.f32.mrf.mxu1  ;;  %v575_v38 = vadd.f32 %v574_v27, %v496_v25  ;;  %v593_v39 = vadd.f32 %v592_v29, %v549_v26  ;;  %v687_v41 = vadd.f32 %v651_v24, %v647_v23 }
 0x12a   :  { %567 = vst [vmem:[#allocation7 + $0x48] sm:$0xff] %v498_v35  ;;  %v653_v40 = vmul.f32 %v498_v35, %v498_v35  ;;  %569 = vst [vmem:[#allocation7 + $0x58] sm:$0xff] %v551_v36  ;;  %v661_v42 = vadd.f32 %v660_v28, %v652_v30  ;;  %v584_v43 = vadd.f32 %v583_v32, %v498_v35 }
 0x12b   :  { %v655_v44 = vmul.f32 %v551_v36, %v551_v36  ;;  %v500_v45 = vpop.f32.mrf.mxu0  ;;  %v553_v46 = vpop.f32.mrf.mxu1  ;;  %v602_v47 = vadd.f32 %v601_v33, %v551_v36  ;;  %v679_v51 = vadd.f32 %v678_v31, %v654_v34 }
 0x12c   :  { %570 = vst [vmem:[#allocation7 + $0x60] sm:$0xff] %v500_v45  ;;  %v576_v48 = vadd.f32 %v575_v38, %v500_v45  ;;  %v656_v49 = vmul.f32 %v500_v45, %v500_v45  ;;  %572 = vst [vmem:[#allocation7 + $0x70] sm:$0xff] %v553_v46  ;;  %v594_v50 = vadd.f32 %v593_v39, %v553_v46 }
 0x12d   :  { %v670_v52 = vadd.f32 %v669_v37, %v653_v40  ;;  %v688_v53 = vadd.f32 %v687_v41, %v655_v44  ;;  %v658_v54 = vmul.f32 %v553_v46, %v553_v46  ;;  %v502_v55 = vpop.f32.mrf.mxu0  ;;  %v555_v56 = vpop.f32.mrf.mxu1 }
 0x12e   :  { %v577_v57 = vrot.slane %v576_v48, 4  ;;  %v662_v58 = vadd.f32 %v661_v42, %v656_v49  ;;  %v595_v59 = vrot.slane %v594_v50, 4  ;;  %571 = vst [vmem:[#allocation7 + $0x68] sm:$0xff] %v502_v55  ;;  %v585_v60 = vadd.f32 %v584_v43, %v502_v55  ;;  %573 = vst [vmem:[#allocation7 + $0x78] sm:$0xff] %v555_v56 }
 0x12f   :  { %v680_v61 = vadd.f32 %v679_v51, %v658_v54  ;;  %v657_v62 = vmul.f32 %v502_v55, %v502_v55  ;;  %v603_v63 = vadd.f32 %v602_v47, %v555_v56  ;;  %v659_v0 = vmul.f32 %v555_v56, %v555_v56 }
 0x130   :  { %1004 = shalt.err (!%p1001_p0)
}
 0x131   :  { %s1069_s30 = smov 512   ;;  %s1070_s5 = smov 32   ;;  %v578_v1 = vadd.f32 %v577_v57, %v576_v48  ;;  %v663_v2 = vrot.slane %v662_v58, 4  ;;  %v596_v3 = vadd.f32 %v595_v59, %v594_v50  ;;  %v586_v4 = vrot.slane %v585_v60, 4 }
 0x132   :  { %737 = dma.vmem_to_hbm [thread:$0]  %s1110_s1, 2048, %s1140_s2, [#allocation4], %s1069_s30, %s1069_s30, %s1070_s5   ;;  %v681_v5 = vrot.slane %v680_v61, 4  ;;  %v671_v6 = vadd.f32 %v670_v52, %v657_v62  ;;  %v604_v7 = vrot.slane %v603_v63, 4  ;;  %v689_v8 = vadd.f32 %v688_v53, %v659_v0 }
 0x133   :  { %v579_v11 = vrot.slane %v578_v1, 2  ;;  %v664_v12 = vadd.f32 %v663_v2, %v662_v58  ;;  %v597_v13 = vrot.slane %v596_v3, 2  ;;  %v587_v14 = vadd.f32 %v586_v4, %v585_v60  ;;  %s1071_s2 = smov [#allocation8]   ;;  %s1072_s9 = smov [#allocation10]  }
 0x134   :  { %v682_v15 = vadd.f32 %v681_v5, %v680_v61  ;;  %v672_v16 = vrot.slane %v671_v6, 4  ;;  %v605_v17 = vadd.f32 %v604_v7, %v603_v63  ;;  %v690_v18 = vrot.slane %v689_v8, 4  ;;  %s744_s8 = sshll.u32 %s1071_s2, 4  ;;  %s754_s10 = sshll.u32 %s1072_s9, 4  ;;  %s745_s8 = int_to_ptr.vmem [resolvable:$true] %s744_s8  ;;  %s755_s10 = int_to_ptr.vmem [resolvable:$true] %s754_s10 }
 0x135   :  { %v580_v21 = vadd.f32 %v579_v11, %v578_v1  ;;  %v665_v22 = vrot.slane %v664_v12, 2  ;;  %v598_v23 = vadd.f32 %v597_v13, %v596_v3  ;;  %v588_v24 = vrot.slane %v587_v14, 2  ;;  %s1013_s11 = scalar_lea.vmem %s745_s8, 64  ;;  %p1018_p2 = scmp.lt.s32.totalorder %s745_s8, %s745_s8 }
 0x136   :  { %v683_v25 = vrot.slane %v682_v15, 2  ;;  %v673_v26 = vadd.f32 %v672_v16, %v671_v6  ;;  %v606_v27 = vrot.slane %v605_v17, 2  ;;  %v691_v28 = vadd.f32 %v690_v18, %v689_v8  ;;  %p1014_p1 = scmp.ne.s32.totalorder %s745_s8, %s1013_s11  ;;  %p1019_p3 = scmp.lt.s32.totalorder %s1013_s11, %s1013_s11 }
 0x137   :  { %v581_v29 = vrot.slane %v580_v21, 1  ;;  %v666_v30 = vadd.f32 %v665_v22, %v664_v12  ;;  %v599_v31 = vrot.slane %v598_v23, 1  ;;  %v589_v32 = vadd.f32 %v588_v24, %v587_v14 }
 0x138   :  { %v684_v33 = vadd.f32 %v683_v25, %v682_v15  ;;  %v674_v34 = vrot.slane %v673_v26, 2  ;;  %v607_v35 = vadd.f32 %v606_v27, %v605_v17  ;;  %v692_v36 = vrot.slane %v691_v28, 2  ;;  %p1020_p4 = por %p1019_p3, %p1018_p2 }
 0x139   :  { %v667_v37 = vrot.slane %v666_v30, 1  ;;  %v590_v38 = vrot.slane %v589_v32, 1  ;;  %v582_v43 = vadd.f32 %v581_v29, %v580_v21  ;;  %v621_v45 = vsub.s32 %v618_v19, %v1108_v20 }
 0x13a   :  { %v685_v39 = vrot.slane %v684_v33, 1  ;;  %v675_v40 = vadd.f32 %v674_v34, %v673_v26  ;;  %v608_v41 = vrot.slane %v607_v35, 1  ;;  %v693_v42 = vadd.f32 %v692_v36, %v691_v28  ;;  %p1021_p5 = pnand %p1020_p4, %p1014_p1 }
 0x13b   :  { %v591_v44 = vadd.f32 %v590_v38, %v589_v32  ;;  %v600_v46 = vadd.f32 %v599_v31, %v598_v23  ;;  %v668_v50 = vadd.f32 %v667_v37, %v666_v30  ;;  %vm1124_vm0 = vcmp.lt.s32.totalorder %v619_v10, 512 }
 0x13c   :  { %v676_v47 = vrot.slane %v675_v40, 1  ;;  %v609_v48 = vadd.f32 %v608_v41, %v607_v35  ;;  %v694_v49 = vrot.slane %v693_v42, 1  ;;  %v686_v52 = vadd.f32 %v685_v39, %v684_v33 }
 0x13d   :  { %v614_v51 = vcombine.low %v582_v43, %v591_v44 }
 0x13e   :  { %v677_v53 = vadd.f32 %v676_v47, %v675_v40  ;;  %v615_v54 = vcombine.low %v600_v46, %v609_v48  ;;  %v695_v55 = vadd.f32 %v694_v49, %v693_v42 }
 0x13f   :  { %v622_v56 = vrot.slane %v614_v51, %v621_v45 }
 0x140   :  { %v700_v57 = vcombine.low %v668_v50, %v677_v53  ;;  %v701_v58 = vcombine.low %v686_v52, %v695_v55  ;;  %v629_v59 = vrot.slane %v615_v54, %v621_v45 }
 0x142   :  { %v630_v60 = vcombine.low %v622_v56, %v629_v59  ;;  %v708_v61 = vrot.slane %v700_v57, %v621_v45  ;;  %v715_v9 = vrot.slane %v701_v58, %v621_v45 }
 0x144   :  { %v637_v20 = vrot.slane %v630_v60, %v621_v45  ;;  %v716_v62 = vcombine.low %v708_v61, %v715_v9 }
 0x146   :  { %643 = vst.msk [vmem:[#allocation8] sm:$0xf] %vm1124_vm0, %v637_v20  ;;  %v723_v63 = vrot.slane %v716_v62, %v621_v45 }
 0x147   :  { %1024 = shalt.err (!%p1021_p5)
}
 0x148   :  { %747 = dma.vmem_to_hbm [thread:$0]  %s745_s8, 64, %s1141_s3, [#allocation9]   ;;  %725 = vst.msk [vmem:[#allocation10] sm:$0xf] %vm1124_vm0, %v723_v63 }
 0x149   :  { %s1033_s14 = scalar_lea.vmem %s755_s10, 64  ;;  %p1038_p7 = scmp.lt.s32.totalorder %s755_s10, %s755_s10 }
 0x14a   :  { %p1034_p6 = scmp.ne.s32.totalorder %s755_s10, %s1033_s14  ;;  %p1039_p8 = scmp.lt.s32.totalorder %s1033_s14, %s1033_s14 }
 0x14c   :  { %p1040_p9 = por %p1039_p8, %p1038_p7 }
 0x14e   :  { %p1041_p10 = pnand %p1040_p9, %p1034_p6 }
 0x150   :  { %1044 = shalt.err (!%p1041_p10)
}
 0x151   :  { %757 = dma.vmem_to_hbm [thread:$0]  %s755_s10, 64, %s1142_s4, [#allocation9]  }
 0x152   :  { %1057 = dma.done.wait [#allocation4], 2048  }
 0x153   :  { %1058 = vsyncadd [#allocation4], 4294965248 }
 0x154   :  { %1059 = dma.done.wait [#allocation9], 128  }
 0x155   :  { %1060 = vsyncadd [#allocation9], 4294967168 }
 0x156   :  { %767 = vsyncpa [#allocation3], 1 }
 0x157   :  { %768 = vsyncpa [#allocation6], 1 }
 0x158   :  { %769 = vsyncpa [#allocation4], 1 }
 0x159   :  { %770 = vsyncpa [#allocation9], 1 }

</bundles_post_ra>
